<compile_context>
chip_gen: v6e
topology: v6e:2x2x1
jax: 0.10.0
libtpu: 0.0.40
codegen_flags: <defaults>
</compile_context>

<pallas_src>
import jax
import jax.numpy as jnp
import numpy as np
from jax import lax
from jax.experimental import pallas as pl
from jax.experimental.pallas import tpu as pltpu

EPS = 1e-5  # nn.LayerNorm default eps


# ---------------------------------------------------------------------------
# Pallas kernels
# ---------------------------------------------------------------------------
def _merge_ln_reduce_kernel(x_ref, g_ref, b_ref, w_ref, o_ref):
    """Fused patch-merge + LayerNorm(4C) + Linear(4C -> 2C, bias=False).

    x_ref: (tb, 2, Wh, 2C) f32  -- free-reshaped view of x; channel order of the
           assembled 4C vector is [x0, x2, x1, x3]; g/b/w are pre-permuted.
    g_ref, b_ref: (1, 4C) f32   w_ref: (4C, 2C) bf16   o_ref: (tb*Wh, 2C) f32
    """
    tb = x_ref.shape[0]
    wh = x_ref.shape[2]
    a = x_ref[:, 0, :, :]                                 # (tb, Wh, 2C) = [x0|x2]
    b = x_ref[:, 1, :, :]                                 # (tb, Wh, 2C) = [x1|x3]
    xm = jnp.concatenate([a, b], axis=-1)                 # (tb, Wh, 4C)
    xm = xm.reshape(tb * wh, xm.shape[-1])                # (rows, 4C)
    mu = jnp.mean(xm, axis=-1, keepdims=True)
    var = jnp.mean(jnp.square(xm - mu), axis=-1, keepdims=True)
    xn = (xm - mu) * lax.rsqrt(var + EPS)
    xn = xn * g_ref[...] + b_ref[...]                     # f32 affine
    o_ref[...] = jnp.dot(xn.astype(jnp.bfloat16), w_ref[...],
                         preferred_element_type=jnp.float32)


def _conv3x3s2_kernel(p_ref, w_ref, b_ref, o_ref):
    """3x3 / stride-2 / pad-1 conv, taps formed in VMEM from polyphase planes.

    p_ref: (1, 4, Hh+1, Wh+1, Cc) bf16 parity planes of the zero-padded input
           (plane q = 2*jh + jw holds padded[2i+jh, 2j+jw]).
    w_ref: (9, Cc, Cc) bf16, tap-major (kh*3+kw), layout (ci, co).
    b_ref: (1, Cc) f32.      o_ref: (1, Hh*Wh, Cc) f32.
    """
    hh = p_ref.shape[2] - 1
    wh = p_ref.shape[3] - 1
    cc = p_ref.shape[4]
    acc = jnp.zeros((hh * wh, cc), jnp.float32)
    for kh in range(3):
        for kw in range(3):
            q = (kh % 2) * 2 + (kw % 2)
            ah, aw = kh // 2, kw // 2
            tap = p_ref[0, q, ah:ah + hh, aw:aw + wh, :]  # (Hh, Wh, Cc), contiguous
            tap = tap.reshape(hh * wh, cc)
            acc = acc + jnp.dot(tap, w_ref[kh * 3 + kw],
                                preferred_element_type=jnp.float32)
    o_ref[0] = acc + b_ref[...]


def _dual_linear_kernel(a_ref, w_ref, o_ref):
    """Bias-free linear; grid axis selects (rows, weight) pair."""
    o_ref[0] = jnp.dot(a_ref[0], w_ref[0], preferred_element_type=jnp.float32)


# ---------------------------------------------------------------------------
# Wrappers (pallas_call plumbing)
# ---------------------------------------------------------------------------
def _pick_row_tile(n_groups, wh, max_rows=256):
    """Largest divisor of n_groups giving <= max_rows rows/block and >=2 steps."""
    for d in range(n_groups, 0, -1):
        if n_groups % d:
            continue
        if d * wh <= max_rows and (n_groups // d >= 2 or n_groups == 1):
            return d
    return 1


def merged_ln_reduce(x, gamma, beta, w_red, H, W):
    B, L, C = x.shape
    Hh, Wh = H // 2, W // 2
    C4, C2 = 4 * C, w_red.shape[1]

    # Free reshape: (B, H*W, C) -> (B*Hh, 2, Wh, 2C).  The assembled 4C channel
    # order becomes [x0, x2, x1, x3]; fold that permutation into the params.
    xr = x.reshape(B * Hh, 2, Wh, 2 * C)
    perm = np.concatenate([np.arange(C), 2 * C + np.arange(C),
                           C + np.arange(C), 3 * C + np.arange(C)])
    g_p = gamma[perm].reshape(1, C4)
    b_p = beta[perm].reshape(1, C4)
    w_p = w_red[perm, :].astype(jnp.bfloat16)

    n_groups = B * Hh
    tb = _pick_row_tile(n_groups, Wh)
    grid = (n_groups // tb,)
    rows_blk = tb * Wh

    out = pl.pallas_call(
        _merge_ln_reduce_kernel,
        out_shape=jax.ShapeDtypeStruct((B * Hh * Wh, C2), jnp.float32),
        grid=grid,
        in_specs=[
            pl.BlockSpec((tb, 2, Wh, 2 * C), lambda i: (i, 0, 0, 0)),
            pl.BlockSpec((1, C4), lambda i: (0, 0)),
            pl.BlockSpec((1, C4), lambda i: (0, 0)),
            pl.BlockSpec((C4, C2), lambda i: (0, 0)),
        ],
        out_specs=pl.BlockSpec((rows_blk, C2), lambda i: (i, 0)),
        compiler_params=pltpu.CompilerParams(dimension_semantics=("parallel",)),
    )(xr, g_p, b_p, w_p)
    return out.reshape(B, Hh * Wh, C2)


def spa_attn_downsample(raw_spa_attn, w_conv, b_conv):
    """Conv2d(Cc, Cc, 3, stride=2, pad=1) on NCHW attention maps."""
    B, nheads, T, H, W = raw_spa_attn.shape
    Cc = nheads * T
    Hh, Wh = H // 2, W // 2

    # Tiny (~31 KB) polyphase split of the padded input; this replaces the 9x
    # im2col HBM expansion -- the 9 taps are assembled in VMEM inside the kernel.
    spa = raw_spa_attn.reshape(B, Cc, H, W).astype(jnp.bfloat16)
    spa_p = jnp.pad(spa, ((0, 0), (0, 0), (1, 1), (1, 1)))        # (B,Cc,H+2,W+2)
    spa_r = spa_p.reshape(B, Cc, Hh + 1, 2, Wh + 1, 2)
    planes = jnp.transpose(spa_r, (0, 3, 5, 2, 4, 1))             # (B,2,2,Hh+1,Wh+1,Cc)
    planes = planes.reshape(B, 4, Hh + 1, Wh + 1, Cc)

    # torch OIHW -> (kh, kw, ci, co) -> (9, Cc, Cc)
    w_taps = jnp.transpose(w_conv, (2, 3, 1, 0)).reshape(9, Cc, Cc).astype(jnp.bfloat16)
    b2 = b_conv.reshape(1, Cc).astype(jnp.float32)

    out = pl.pallas_call(
        _conv3x3s2_kernel,
        out_shape=jax.ShapeDtypeStruct((B, Hh * Wh, Cc), jnp.float32),
        grid=(B,),
        in_specs=[
            pl.BlockSpec((1, 4, Hh + 1, Wh + 1, Cc), lambda b: (b, 0, 0, 0, 0)),
            pl.BlockSpec((9, Cc, Cc), lambda b: (0, 0, 0)),
            pl.BlockSpec((1, Cc), lambda b: (0, 0)),
        ],
        out_specs=pl.BlockSpec((1, Hh * Wh, Cc), lambda b: (b, 0, 0)),
        compiler_params=pltpu.CompilerParams(dimension_semantics=("parallel",)),
    )(planes, w_taps, b2)

    # (B, Hh*Wh, Cc) -> NCHW (B, Cc, Hh*Wh) -> (B, nheads, T, Hh, Wh).
    # The channel-major store would need a minor-dims transpose of a (Hh*Wh, Cc)
    # tile in-kernel; the output is ~6 KB so the layout swap stays in XLA.
    return jnp.transpose(out, (0, 2, 1)).reshape(B, nheads, T, Hh, Wh)


def chan_and_prompt_up(raw_chan_attn, task_prompts, w_chan, w_up):
    """Both bias-free Linears (C -> 2C) in a single pallas_call (grid axis = 2)."""
    B, nheads, C, T = raw_chan_attn.shape
    C2 = w_chan.shape[1]
    Tt = task_prompts.shape[1]

    ca_rows = jnp.swapaxes(raw_chan_attn, 2, 3).reshape(B * nheads * T, C)
    tp_rows = task_prompts.reshape(-1, C)
    n_ca, n_tp = ca_rows.shape[0], tp_rows.shape[0]
    R = ((max(n_ca, n_tp) + 7) // 8) * 8

    def pad_rows(a):
        return jnp.pad(a, ((0, R - a.shape[0]), (0, 0)))

    rows = jnp.stack([pad_rows(ca_rows), pad_rows(tp_rows)]).astype(jnp.bfloat16)
    weights = jnp.stack([w_chan, w_up]).astype(jnp.bfloat16)

    out = pl.pallas_call(
        _dual_linear_kernel,
        out_shape=jax.ShapeDtypeStruct((2, R, C2), jnp.float32),
        grid=(2,),
        in_specs=[
            pl.BlockSpec((1, R, C), lambda g: (g, 0, 0)),
            pl.BlockSpec((1, C, C2), lambda g: (g, 0, 0)),
        ],
        out_specs=pl.BlockSpec((1, R, C2), lambda g: (g, 0, 0)),
        compiler_params=pltpu.CompilerParams(dimension_semantics=("parallel",)),
    )(rows, weights)

    chan_out = jnp.swapaxes(out[0, :n_ca].reshape(B, nheads, T, C2), 2, 3)
    tp_out = out[1, :n_tp].reshape(B, Tt, C2)
    return chan_out, tp_out


# ---------------------------------------------------------------------------
# Full PatchMerging forward
# ---------------------------------------------------------------------------
def patch_merging_forward(params, input_resolution, x, task_prompts, attn_weight):
    H, W = input_resolution
    B, L, C = x.shape
    assert L == H * W, "input feature has wrong size"
    assert H % 2 == 0 and W % 2 == 0

    # patch merging + LayerNorm + reduction (fused)
    x_out = merged_ln_reduce(x, params["ln_gamma"], params["ln_beta"],
                             params["w_reduction"], H, W)

    raw_spa_attn, raw_chan_attn = attn_weight
    assert raw_spa_attn.shape[-2] == H and raw_spa_attn.shape[-1] == W

    # spatial attention downsample (Conv2d 3x3 s2 p1)
    spa_out = spa_attn_downsample(raw_spa_attn, params["w_conv"], params["b_conv"])

    # channel attention upproject + task prompt upproject (merged call)
    chan_out, tp_out = chan_and_prompt_up(raw_chan_attn, task_prompts,
                                          params["w_chan"], params["w_up"])

    return x_out, tp_out, [spa_out, chan_out]


# ---------------------------------------------------------------------------
# Pure-JAX reference (for verification)
# ---------------------------------------------------------------------------
def reference_forward(params, input_resolution, x, task_prompts, attn_weight):
    H, W = input_resolution
    B, L, C = x.shape
    Hh, Wh = H // 2, W // 2
    x4 = x.reshape(B, H, W, C)
    xm = jnp.concatenate(
        [x4[:, 0::2, 0::2, :], x4[:, 1::2, 0::2, :],
         x4[:, 0::2, 1::2, :], x4[:, 1::2, 1::2, :]], axis=-1
    ).reshape(B, Hh * Wh, 4 * C)
    mu = xm.mean(-1, keepdims=True)
    var = ((xm - mu) ** 2).mean(-1, keepdims=True)
    xn = (xm - mu) / jnp.sqrt(var + EPS) * params["ln_gamma"] + params["ln_beta"]
    x_ref = xn @ params["w_reduction"]

    raw_spa_attn, raw_chan_attn = attn_weight
    _, nheads, T, _, _ = raw_spa_attn.shape
    Cc = nheads * T
    conv = lax.conv_general_dilated(
        raw_spa_attn.reshape(B, Cc, H, W), params["w_conv"],
        window_strides=(2, 2), padding=((1, 1), (1, 1)),
        dimension_numbers=("NCHW", "OIHW", "NCHW"),
    ) + params["b_conv"][None, :, None, None]
    spa_ref = conv.reshape(B, nheads, T, Hh, Wh)

    chan_ref = jnp.swapaxes(jnp.swapaxes(raw_chan_attn, 2, 3) @ params["w_chan"], 2, 3)
    tp_ref = task_prompts @ params["w_up"]
    return x_ref, tp_ref, [spa_ref, chan_ref]


if __name__ == "__main__":
    B, H, W, C = 2, 16, 16, 32          # dim = 32, input_resolution = (16, 16)
    nheads, T = 4, 3                    # len(p.TASKS.NAMES) = 3 tasks
    Cc = nheads * T

    key = jax.random.PRNGKey(0)
    ks = jax.random.split(key, 10)
    x = jax.random.normal(ks[0], (B, H * W, C), jnp.float32)
    task_prompts = jax.random.normal(ks[1], (B, T, C), jnp.float32)
    raw_spa_attn = jax.random.normal(ks[2], (B, nheads, T, H, W), jnp.float32)
    raw_chan_attn = jax.random.normal(ks[3], (B, nheads, C, T), jnp.float32)

    # Deterministic synthetic parameters (shapes follow PatchMerging.__init__).
    # Linear weights are stored pre-transposed: (in_features, out_features).
    params = dict(
        ln_gamma=1.0 + 0.1 * jax.random.normal(ks[4], (4 * C,), jnp.float32),
        ln_beta=0.1 * jax.random.normal(ks[5], (4 * C,), jnp.float32),
        w_reduction=0.02 * jax.random.normal(ks[6], (4 * C, 2 * C), jnp.float32),
        w_chan=0.02 * jax.random.normal(ks[7], (C, 2 * C), jnp.float32),
        w_up=0.02 * jax.random.normal(ks[8], (C, 2 * C), jnp.float32),
        w_conv=0.02 * jax.random.normal(ks[9], (Cc, Cc, 3, 3), jnp.float32),  # OIHW
        b_conv=0.01 * jnp.arange(Cc, dtype=jnp.float32),
    )

    out = patch_merging_forward(
        params, (H, W), x, task_prompts, [raw_spa_attn, raw_chan_attn]
    )
    out = jax.block_until_ready(out)
    x_out, tp_out, (spa_out, chan_out) = out

    # Verify against the pure-JAX reference (bf16 dot operands -> looser tol).
    x_ref, tp_ref, (spa_ref, chan_ref) = reference_forward(
        params, (H, W), x, task_prompts, [raw_spa_attn, raw_chan_attn]
    )
    for got, ref in ((x_out, x_ref), (tp_out, tp_ref),
                     (spa_out, spa_ref), (chan_out, chan_ref)):
        np.testing.assert_allclose(np.asarray(got), np.asarray(ref),
                                   rtol=2e-2, atol=5e-3)

    print("KERNEL_OK")
</pallas_src>

<mosaic_0001>
module attributes {stable_mosaic.version = 11 : i64} {
  func.func @_merge_ln_reduce_kernel(%arg0: i32, %arg1: memref<8x2x8x64xf32, #tpu.memory_space<vmem>>, %arg2: memref<1x128xf32, #tpu.memory_space<vmem>>, %arg3: memref<1x128xf32, #tpu.memory_space<vmem>>, %arg4: memref<128x64xbf16, #tpu.memory_space<vmem>>, %arg5: memref<64x64xf32, #tpu.memory_space<vmem>>) attributes {dimension_semantics = [#tpu.dimension_semantics<parallel>], iteration_bounds = array<i64: 2>, scalar_prefetch = 0 : i64, scratch_operands = 0 : i64, tpu.core_type = #tpu.core_type<tc>, window_params = [{transform_indices = @transform_0, window_bounds = array<i64: 8, 2, 8, 64>}, {pipeline_mode = #tpu.pipeline_mode<synchronous>, transform_indices = @transform_1, window_bounds = array<i64: 1, 128>}, {pipeline_mode = #tpu.pipeline_mode<synchronous>, transform_indices = @transform_2, window_bounds = array<i64: 1, 128>}, {pipeline_mode = #tpu.pipeline_mode<synchronous>, transform_indices = @transform_3, window_bounds = array<i64: 128, 64>}, {transform_indices = @transform_4, window_bounds = array<i64: 64, 64>}]} {
    %c0 = arith.constant 0 : index
    %c0_0 = arith.constant 0 : index
    %c0_1 = arith.constant 0 : index
    %c0_2 = arith.constant 0 : index
    %0 = vector.load %arg1[%c0, %c0_0, %c0_1, %c0_2] : memref<8x2x8x64xf32, #tpu.memory_space<vmem>>, vector<8x1x8x64xf32>
    %1 = vector.shape_cast %0 : vector<8x1x8x64xf32> to vector<8x8x64xf32>
    %c0_3 = arith.constant 0 : index
    %c1 = arith.constant 1 : index
    %c0_4 = arith.constant 0 : index
    %c0_5 = arith.constant 0 : index
    %2 = vector.load %arg1[%c0_3, %c1, %c0_4, %c0_5] : memref<8x2x8x64xf32, #tpu.memory_space<vmem>>, vector<8x1x8x64xf32>
    %3 = vector.shape_cast %2 : vector<8x1x8x64xf32> to vector<8x8x64xf32>
    %4 = tpu.concatenate %1, %3 in 2 : vector<8x8x64xf32>, vector<8x8x64xf32> -> vector<8x8x128xf32>
    %5 = vector.shape_cast %4 : vector<8x8x128xf32> to vector<64x128xf32>
    %cst = arith.constant dense<0.000000e+00> : vector<64xf32>
    %6 = vector.multi_reduction <add>, %5, %cst [1] : vector<64x128xf32> to vector<64xf32>
    %7 = vector.shape_cast %6 : vector<64xf32> to vector<64x1xf32>
    %cst_6 = arith.constant 1.280000e+02 : f32
    %8 = vector.broadcast %cst_6 : f32 to vector<64x1xf32>
    %9 = arith.divf %7, %8 : vector<64x1xf32>
    %10 = vector.broadcast %9 : vector<64x1xf32> to vector<64x128xf32>
    %11 = arith.subf %5, %10 : vector<64x128xf32>
    %12 = arith.mulf %11, %11 : vector<64x128xf32>
    %cst_7 = arith.constant dense<0.000000e+00> : vector<64xf32>
    %13 = vector.multi_reduction <add>, %12, %cst_7 [1] : vector<64x128xf32> to vector<64xf32>
    %14 = vector.shape_cast %13 : vector<64xf32> to vector<64x1xf32>
    %cst_8 = arith.constant 1.280000e+02 : f32
    %15 = vector.broadcast %cst_8 : f32 to vector<64x1xf32>
    %16 = arith.divf %14, %15 : vector<64x1xf32>
    %17 = vector.broadcast %9 : vector<64x1xf32> to vector<64x128xf32>
    %18 = arith.subf %5, %17 : vector<64x128xf32>
    %cst_9 = arith.constant 9.99999974E-6 : f32
    %19 = vector.broadcast %cst_9 : f32 to vector<64x1xf32>
    %20 = arith.addf %16, %19 : vector<64x1xf32>
    %21 = math.rsqrt %20 : vector<64x1xf32>
    %22 = vector.broadcast %21 : vector<64x1xf32> to vector<64x128xf32>
    %23 = arith.mulf %18, %22 : vector<64x128xf32>
    %c0_10 = arith.constant 0 : index
    %c0_11 = arith.constant 0 : index
    %24 = vector.load %arg2[%c0_10, %c0_11] : memref<1x128xf32, #tpu.memory_space<vmem>>, vector<1x128xf32>
    %25 = vector.broadcast %24 : vector<1x128xf32> to vector<64x128xf32>
    %26 = arith.mulf %23, %25 : vector<64x128xf32>
    %c0_12 = arith.constant 0 : index
    %c0_13 = arith.constant 0 : index
    %27 = vector.load %arg3[%c0_12, %c0_13] : memref<1x128xf32, #tpu.memory_space<vmem>>, vector<1x128xf32>
    %28 = vector.broadcast %27 : vector<1x128xf32> to vector<64x128xf32>
    %29 = arith.addf %26, %28 : vector<64x128xf32>
    %30 = arith.truncf %29 : vector<64x128xf32> to vector<64x128xbf16>
    %c0_14 = arith.constant 0 : index
    %c0_15 = arith.constant 0 : index
    %31 = vector.load %arg4[%c0_14, %c0_15] : memref<128x64xbf16, #tpu.memory_space<vmem>>, vector<128x64xbf16>
    %cst_16 = arith.constant dense<0.000000e+00> : vector<64x64xf32>
    %32 = tpu.matmul %30, %31, %cst_16 {dimension_numbers = #tpu.dot_dimension_numbers<[1], [0], [0], [1], [0, 0, 1, 1], [], []>} : vector<64x128xbf16>, vector<128x64xbf16>, vector<64x64xf32> -> vector<64x64xf32>
    %c0_17 = arith.constant 0 : index
    %c0_18 = arith.constant 0 : index
    %33 = vector.load %arg5[%c0_17, %c0_18] : memref<64x64xf32, #tpu.memory_space<vmem>>, vector<64x64xf32>
    tpu.vector_store %arg5[%c0_17, %c0_18], %32 {strides = array<i32>} : memref<64x64xf32, #tpu.memory_space<vmem>>, vector<64x64xf32>,
    return
  }
  func.func @transform_0(%arg0: i32) -> (i32, i32, i32, i32) {
    %c0_i32 = arith.constant 0 : i32
    %c0_i32_0 = arith.constant 0 : i32
    %c0_i32_1 = arith.constant 0 : i32
    %c0_i32_2 = arith.constant 0 : i32
    return %arg0, %c0_i32, %c0_i32_0, %c0_i32_1 : i32, i32, i32, i32
  }
  func.func @transform_1(%arg0: i32) -> (i32, i32) {
    %c0_i32 = arith.constant 0 : i32
    %c0_i32_0 = arith.constant 0 : i32
    %c0_i32_1 = arith.constant 0 : i32
    return %c0_i32, %c0_i32_0 : i32, i32
  }
  func.func @transform_2(%arg0: i32) -> (i32, i32) {
    %c0_i32 = arith.constant 0 : i32
    %c0_i32_0 = arith.constant 0 : i32
    %c0_i32_1 = arith.constant 0 : i32
    return %c0_i32, %c0_i32_0 : i32, i32
  }
  func.func @transform_3(%arg0: i32) -> (i32, i32) {
    %c0_i32 = arith.constant 0 : i32
    %c0_i32_0 = arith.constant 0 : i32
    %c0_i32_1 = arith.constant 0 : i32
    return %c0_i32, %c0_i32_0 : i32, i32
  }
  func.func @transform_4(%arg0: i32) -> (i32, i32) {
    %c0_i32 = arith.constant 0 : i32
    %c0_i32_0 = arith.constant 0 : i32
    return %arg0, %c0_i32 : i32, i32
  }
}

</mosaic_0001>

<bundles_post_ra>
// kernel: tpu_custom_call.1
= control target key start
LH: loop header
LB: loop body
LE: loop exit
PB: predicated region body
PF: predicated region fallthrough
CT: control target
= control target key end

     0   :  { %9 = vsyncpa [#allocation3], 0  ;;  %s1056_s0 = inlined_call_operand.hbm [shape: f32[16,2,8,64], index: 0, kind: input, shape index: {}]   ;;  %s1057_s1 = inlined_call_operand.vmem [shape: f32[1,128], index: 1, kind: input, shape index: {}]   ;;  %s1058_s2 = inlined_call_operand.vmem [shape: f32[1,128], index: 2, kind: input, shape index: {}]   ;;  %s1059_s3 = inlined_call_operand.vmem [shape: bf16[128,64], index: 3, kind: input, shape index: {}]   ;;  %s1060_s4 = inlined_call_operand.vmem [shape: f32[128,64], index: 4, kind: output, shape index: {}]  }
   0x1   :  { %11 = vsyncpa [#allocation3 + $0x1], 0  ;;  %s852_s15 = smov 0   ;;  %s854_s16 = smov 0  }
   0x2   :  { %s856_s17 = smov 0   ;;  %s858_s18 = smov 0  }
   0x3 LB: > { %s607_s19 = sadd.s32 4294967295, %s821_s18   ;;  %s872_s20 = sadd.s32 1, %s821_s18   ;;  %s821_s18 = sphi %s858_s18, %s1069_s18   ;;  %s817_s17 = sphi %s856_s17, %s1068_s17   ;;  %s813_s16 = sphi %s854_s16, %s1067_s16   ;;  %s809_s15 = sphi %s852_s15, %s1066_s15  }
   0x4   : > { %s21_s21 = ssub.s32 %s821_s18, %s872_s20  ;;  %s24_s22 = sadd.s32 1, %s817_s17 }
   0x5   : > { %p22_p0 = scmp.eq.s32.totalorder %s21_s21, 0  ;;  %p31_p1 = scmp.ne.s32.totalorder %s817_s17, %s813_s16 }
   0x6   : > { %p32_p2 = scmp.eq.s32.totalorder %s821_s18, 0  ;;  %p37_p3 = scmp.ne.s32.totalorder %s813_s16, %s809_s15 }
   0x7   : > { %s882_s23 = scalar_select %p22_p0, %s817_s17, %s24_s22  }
   0x8   : > { %p33_p4 = por %p32_p2, %p31_p1  ;;  %p38_p5 = scmp.eq.s32.totalorder %s607_s19, 0 }
   0x9   : > { %p699_p6 = scmp.lt.s32.totalorder %s821_s18, 2  ;;  %s159_s25 = sand.u32 1, %s817_s17  }
   0xa   : > { %p887_p7 = por %p38_p5, %p37_p3  ;;  %s611_s26 = sshll.u32 %s159_s25, 7 }
   0xb   : > { %s640_s27 = sshll.u32 %s821_s18, 11  ;;  %s163_s5 = scalar_lea.vmem [#allocation2], %s611_s26 }
   0xc   : > { %s1062_s24 = scalar_select %p887_p7, 1, 0 }
   0xd   : > { %s896_s30 = scalar_lea.hbm %s1056_s0, %s640_s27  ;;  %s171_s6 = sshll.u32 %s163_s5, 4  ;;  %s898_s6 = int_to_ptr.vmem [resolvable:$true] %s171_s6 }
   0xe   : > { %p900_p8 = pnand %p699_p6, %p33_p4  ;;  %s905_s8 = scalar_lea.sflag [#allocation3], %s159_s25 }
   0xf   : > { %s759_s9 = scalar_lea.hbm %s896_s30, 2048  ;;  %s764_s12 = scalar_lea.hbm %s1056_s0, 4096 }
  0x10   : > { %p760_p10 = scmp.ne.s32.totalorder %s896_s30, %s759_s9  ;;  %p761_p11 = pneg %p900_p8 }
  0x11   : > { %p765_p0 = scmp.lt.s32.totalorder %s896_s30, %s1056_s0  ;;  %p766_p1 = scmp.lt.s32.totalorder %s764_s12, %s759_s9 }
  0x12   : > { %p762_p12 = pnand %p761_p11, %p760_p10 }
  0x13   : > { %p767_p2 = por %p766_p1, %p765_p0 }
  0x14   : > { %p763_p13 = pneg %p762_p12 }
  0x16   : > { %p768_p3 = pnand %p767_p2, %p763_p13 }
  0x18   : > { %771 = shalt.err (!%p768_p3)
}
  0x19   : > { %s772_s15 = scalar_lea.vmem %s898_s6, 2048  ;;  %s823_s21 = smov [#allocation2]  }
  0x1a   : > { %p773_p4 = scmp.ne.s32.totalorder %s898_s6, %s772_s15  ;;  %s777_s22 = sshll.u32 %s823_s21, 4  ;;  %s778_s22 = int_to_ptr.vmem [resolvable:$false] %s777_s22 }
  0x1b   : > { %s779_s25 = scalar_lea.vmem %s778_s22, 4096  ;;  %p780_p10 = scmp.lt.s32.totalorder %s898_s6, %s778_s22 }
  0x1c   : > { %p775_p5 = pnand %p773_p4, %p761_p11  ;;  %p781_p12 = scmp.lt.s32.totalorder %s779_s25, %s772_s15 }
  0x1e   : > { %p776_p6 = pneg %p775_p5  ;;  %p782_p9 = por %p781_p12, %p780_p10 }
  0x20   : > { %p783_p7 = pnand %p782_p9, %p776_p6 }
  0x22   : > { %786 = shalt.err (!%p783_p7)
}
  0x23   : > { %s824_s26 = smov 128   ;;  %s825_s27 = smov 8  }
  0x24   : > { %698 = dma.hbm_to_vmem [thread:$0]  (!%p900_p8), %s896_s30, 2048, %s898_s6, %s905_s8, %s824_s26, %s824_s26, %s825_s27  }
  0x25   : > { %p179_p11 = scmp.lt.s32.totalorder %s821_s18, 3  ;;  %p1064_p13 = scmp.ge.s32.totalorder %s821_s18, 1 }
  0x27   : > { %p180_p0 = pnand %p1064_p13, %p179_p11 }
  0x28   : > { %s185_s28 = sand.u32 (!%p180_p0), 1, %s813_s16   ;;  %p1065_p7 = scmp.ne.s32.totalorder (!%p180_p0), %s1062_s24, 0 }
  0x29   : > { %183 = sbr.rel (%p180_p0) target bundleno = 688 (0x2b0), region = 36  ;;  %s616_s29 = sshll.u32 (!%p180_p0), %s185_s28, 7 }
  0x2a   : > { %s186_s5 = scalar_lea.sflag (!%p180_p0), [#allocation3], %s185_s28  ;;  %s930_s9 = scalar_lea.vmem (!%p180_p0), [#allocation2], %s616_s29 }
  0x2e   : > { %804 = dma.done.wait (%p1065_p7), %s186_s5, 2048  }
  0x2f   : > { %806 = vsyncadd (%p1065_p7), %s186_s5, 4294965248  ;;  %v619_v0 = vld [vmem:[%s930_s9 + $0x8] sm:$0xff]  ;;  %s826_s30 = smov 64   ;;  %v620_v2 = vld [vmem:[%s930_s9 + $0x18] sm:$0xff]  ;;  %vm271_vm0 = vcmask 523264   ;;  %s617_s24 = sshll.u32 %s607_s19, 3 }
  0x30   : > { %v623_v1 = vld [vmem:[%s930_s9 + $0x48] sm:$0xff]  ;;  %247 = vrot.lane.b32.xlu0 %v619_v0, %s826_s30  ;;  %v624_v3 = vld [vmem:[%s930_s9 + $0x58] sm:$0xff]  ;;  %v222_v8 = vld [vmem:[%s930_s9] sm:$0xff]  ;;  %p216_p8 = scmp.lt.s32.totalorder %s617_s24, 15 }
  0x31   : > { %255 = vrot.lane.b32.xlu1 %v623_v1, %s826_s30  ;;  %v621_v4 = vld [vmem:[%s930_s9 + $0x28] sm:$0xff]  ;;  %v622_v5 = vld [vmem:[%s930_s9 + $0x38] sm:$0xff]  ;;  %v226_v11 = vld [vmem:[%s930_s9 + $0x40] sm:$0xff] }
  0x32   : > { %v625_v6 = vld [vmem:[%s930_s9 + $0x68] sm:$0xff]  ;;  %v626_v7 = vld [vmem:[%s930_s9 + $0x78] sm:$0xff]  ;;  %v223_v13 = vld [vmem:[%s930_s9 + $0x10] sm:$0xff]  ;;  %s1071_s24 = smov (!%p216_p8, %s617_s24), 15 }
  0x33   : > { %v227_v17 = vld [vmem:[%s930_s9 + $0x50] sm:$0xff]  ;;  %v224_v19 = vld [vmem:[%s930_s9 + $0x20] sm:$0xff]  ;;  %v735_v0 = vld [vmem:[%s1059_s3 + $0x38] sm:$0xff]   ;;  %s618_s6 = sshll.u32 %s1071_s24, 3 }
  0x34   : > { %249 = vrot.lane.b32.xlu0 %v620_v2, %s826_s30  ;;  %v225_v23 = vld [vmem:[%s930_s9 + $0x30] sm:$0xff]  ;;  %v228_v25 = vld [vmem:[%s930_s9 + $0x60] sm:$0xff]  ;;  %653 = vmatprep.subr.bf16.mxu0 %v735_v0  ;;  %v737_v2 = vld [vmem:[%s1059_s3 + $0x28] sm:$0xff]   ;;  %s219_s10 = scalar_lea.vmem %s1060_s4, %s618_s6 }
  0x35   : > { %257 = vrot.lane.b32.xlu1 %v624_v3, %s826_s30  ;;  %v229_v29 = vld [vmem:[%s930_s9 + $0x70] sm:$0xff]  ;;  %677 = vmatprep.subr.bf16.mxu1 %v735_v0  ;;  %v738_v3 = vld [vmem:[%s1059_s3 + $0x20] sm:$0xff]  }
  0x36   : > { %654 = vmatpush3.bf16.msra.mxu0 %v735_v0  ;;  %685 = vmatpush3.bf16.msra.mxu1 %v735_v0  ;;  %v736_v1 = vld [vmem:[%s1059_s3 + $0x30] sm:$0xff]  }
  0x37   : > { %655 = vmatprep.subr.bf16.mxu0 %v736_v1  ;;  %678 = vmatprep.subr.bf16.mxu1 %v736_v1 }
  0x38   : > { %251 = vrot.lane.b32.xlu0 %v621_v4, %s826_s30  ;;  %v739_v4 = vld [vmem:[%s1059_s3 + $0x18] sm:$0xff]  }
  0x39   : > { %253 = vrot.lane.b32.xlu1 %v622_v5, %s826_s30  ;;  %v740_v5 = vld [vmem:[%s1059_s3 + $0x10] sm:$0xff]  }
  0x3a   : > { %656 = vmatpush3.bf16.msra.mxu0 %v736_v1  ;;  %686 = vmatpush3.bf16.msra.mxu1 %v736_v1 }
  0x3b   : > { %657 = vmatprep.subr.bf16.mxu0 %v737_v2  ;;  %679 = vmatprep.subr.bf16.mxu1 %v737_v2 }
  0x3c   : > { %259 = vrot.lane.b32.xlu0 %v625_v6, %s826_s30  ;;  %v741_v6 = vld [vmem:[%s1059_s3 + $0x8] sm:$0xff]  }
  0x3d   : > { %261 = vrot.lane.b32.xlu1 %v626_v7, %s826_s30  ;;  %v742_v7 = vld [vmem:[%s1059_s3] sm:$0xff]  }
  0x3e   : > { %658 = vmatpush3.bf16.msra.mxu0 %v737_v2  ;;  %687 = vmatpush3.bf16.msra.mxu1 %v737_v2 }
  0x3f   : > { %659 = vmatprep.subr.bf16.mxu0 %v738_v3  ;;  %680 = vmatprep.subr.bf16.mxu1 %v738_v3 }
  0x42   : > { %660 = vmatpush3.bf16.msra.mxu0 %v738_v3  ;;  %688 = vmatpush3.bf16.msra.mxu1 %v738_v3 }
  0x43   : > { %661 = vmatprep.subr.bf16.mxu0 %v739_v4  ;;  %681 = vmatprep.subr.bf16.mxu1 %v739_v4 }
  0x46   : > { %662 = vmatpush3.bf16.msra.mxu0 %v739_v4  ;;  %689 = vmatpush3.bf16.msra.mxu1 %v739_v4 }
  0x47   : > { %663 = vmatprep.subr.bf16.mxu0 %v740_v5  ;;  %682 = vmatprep.subr.bf16.mxu1 %v740_v5 }
  0x4a   : > { %664 = vmatpush3.bf16.msra.mxu0 %v740_v5  ;;  %690 = vmatpush3.bf16.msra.mxu1 %v740_v5 }
  0x4b   : > { %665 = vmatprep.subr.bf16.mxu0 %v741_v6  ;;  %683 = vmatprep.subr.bf16.mxu1 %v741_v6 }
  0x4e   : > { %666 = vmatpush3.bf16.msra.mxu0 %v741_v6  ;;  %691 = vmatpush3.bf16.msra.mxu1 %v741_v6 }
  0x4f   : > { %667 = vmatprep.subr.bf16.mxu0 %v742_v7  ;;  %684 = vmatprep.subr.bf16.mxu1 %v742_v7 }
  0x52   : > { %668 = vmatpush3.bf16.msra.mxu0 %v742_v7  ;;  %692 = vmatpush3.bf16.msra.mxu1 %v742_v7 }
  0xa2   : > { %v248_v9 = vpop.permute.xlu0 %247 }
  0xa3   : > { %v256_v10 = vpop.permute.xlu1 %255  ;;  %v272_v12 = vsel %vm271_vm0, %v222_v8, %v248_v9 }
  0xa4   : > { %280 = vadd.xlane.f32.xlu0 %v272_v12  ;;  %v276_v14 = vsel %vm271_vm0, %v226_v11, %v256_v10 }
  0xa6   : > { %v250_v15 = vpop.permute.xlu0 %249 }
  0xa7   : > { %v258_v16 = vpop.permute.xlu1 %257  ;;  %v273_v18 = vsel %vm271_vm0, %v223_v13, %v250_v15 }
  0xa8   : > { %282 = vadd.xlane.f32.xlu1 %v273_v18  ;;  %288 = vadd.xlane.f32.xlu0 %v276_v14  ;;  %v277_v20 = vsel %vm271_vm0, %v227_v17, %v258_v16 }
  0xaa   : > { %v252_v21 = vpop.permute.xlu0 %251 }
  0xab   : > { %v254_v22 = vpop.permute.xlu1 %253  ;;  %v274_v24 = vsel %vm271_vm0, %v224_v19, %v252_v21 }
  0xac   : > { %284 = vadd.xlane.f32.xlu1 %v274_v24  ;;  %290 = vadd.xlane.f32.xlu0 %v277_v20  ;;  %v275_v26 = vsel %vm271_vm0, %v225_v23, %v254_v22 }
  0xae   : > { %v260_v27 = vpop.permute.xlu0 %259 }
  0xaf   : > { %v262_v28 = vpop.permute.xlu1 %261  ;;  %v278_v30 = vsel %vm271_vm0, %v228_v25, %v260_v27 }
  0xb0   : > { %292 = vadd.xlane.f32.xlu1 %v278_v30  ;;  %286 = vadd.xlane.f32.xlu0 %v275_v26  ;;  %v279_v31 = vsel %vm271_vm0, %v229_v29, %v262_v28 }
  0xb4   : > { %294 = vadd.xlane.f32.xlu0 %v279_v31 }
 0x12d   : > { %v281_v32 = vpop.xlane.xlu0 %280 }
 0x12e   : > { %v297_v33 = vmul.f32 0.0078125, %v281_v32 }
 0x130   : > { %v960_v34 = vsub.f32 %v272_v12, %v297_v33 }
 0x131   : > { %v283_v35 = vpop.xlane.xlu1 %282  ;;  %v289_v36 = vpop.xlane.xlu0 %288 }
 0x132   : > { %v298_v37 = vmul.f32 0.0078125, %v283_v35  ;;  %v301_v38 = vmul.f32 0.0078125, %v289_v36  ;;  %v313_v39 = vmul.f32 %v960_v34, %v960_v34  ;;  %v627_v35 = vld [vmem:[%s1057_s1] ss:$0 sm:$0xff] }
 0x134   : > { %v964_v40 = vsub.f32 %v273_v18, %v298_v37  ;;  %v966_v41 = vsub.f32 %v276_v14, %v301_v38  ;;  %321 = vadd.xlane.f32.xlu1 %v313_v39 }
 0x135   : > { %v285_v42 = vpop.xlane.xlu1 %284  ;;  %v291_v43 = vpop.xlane.xlu0 %290 }
 0x136   : > { %v299_v44 = vmul.f32 0.0078125, %v285_v42  ;;  %v302_v45 = vmul.f32 0.0078125, %v291_v43  ;;  %v314_v46 = vmul.f32 %v964_v40, %v964_v40  ;;  %v317_v47 = vmul.f32 %v966_v41, %v966_v41  ;;  %v628_v42 = vld [vmem:[%s1058_s2] ss:$0 sm:$0xff] }
 0x138   : > { %v972_v48 = vsub.f32 %v274_v24, %v299_v44  ;;  %v974_v49 = vsub.f32 %v277_v20, %v302_v45  ;;  %323 = vadd.xlane.f32.xlu0 %v314_v46  ;;  %329 = vadd.xlane.f32.xlu1 %v317_v47 }
 0x139   : > { %v293_v50 = vpop.xlane.xlu1 %292  ;;  %v287_v51 = vpop.xlane.xlu0 %286 }
 0x13a   : > { %v303_v52 = vmul.f32 0.0078125, %v293_v50  ;;  %v300_v53 = vmul.f32 0.0078125, %v287_v51  ;;  %v315_v54 = vmul.f32 %v972_v48, %v972_v48  ;;  %v318_v55 = vmul.f32 %v974_v49, %v974_v49 }
 0x13c   : > { %v980_v56 = vsub.f32 %v278_v30, %v303_v52  ;;  %v982_v57 = vsub.f32 %v275_v26, %v300_v53  ;;  %325 = vadd.xlane.f32.xlu1 %v315_v54  ;;  %331 = vadd.xlane.f32.xlu0 %v318_v55 }
 0x13d   : > { %v295_v58 = vpop.xlane.xlu0 %294 }
 0x13e   : > { %v304_v59 = vmul.f32 0.0078125, %v295_v58  ;;  %v319_v60 = vmul.f32 %v980_v56, %v980_v56  ;;  %v316_v61 = vmul.f32 %v982_v57, %v982_v57 }
 0x140   : > { %v988_v62 = vsub.f32 %v279_v31, %v304_v59  ;;  %333 = vadd.xlane.f32.xlu1 %v319_v60  ;;  %327 = vadd.xlane.f32.xlu0 %v316_v61 }
 0x142   : > { %v320_v63 = vmul.f32 %v988_v62, %v988_v62 }
 0x144   : > { %335 = vadd.xlane.f32.xlu0 %v320_v63 }
 0x1bd   : > { %v322_v8 = vpop.xlane.xlu1 %321 }
 0x1be   : > { %v337_v9 = vmul.f32 0.0078125, %v322_v8 }
 0x1c0   : > { %v345_v10 = vadd.f32 1e-05, %v337_v9 }
 0x1c1   : > { %v330_v11 = vpop.xlane.xlu1 %329  ;;  %v324_v12 = vpop.xlane.xlu0 %323 }
 0x1c2   : > { %743 = vrsqrt.f32 %v345_v10  ;;  %v341_v13 = vmul.f32 0.0078125, %v330_v11  ;;  %v338_v14 = vmul.f32 0.0078125, %v324_v12 }
 0x1c4   : > { %v349_v15 = vadd.f32 1e-05, %v341_v13  ;;  %v346_v16 = vadd.f32 1e-05, %v338_v14 }
 0x1c5   : > { %v326_v17 = vpop.xlane.xlu1 %325  ;;  %v332_v18 = vpop.xlane.xlu0 %331 }
 0x1c6   : > { %745 = vrsqrt.f32 %v349_v15  ;;  %v339_v19 = vmul.f32 0.0078125, %v326_v17  ;;  %v342_v20 = vmul.f32 0.0078125, %v332_v18 }
 0x1c7   : > { %747 = vrsqrt.f32 %v346_v16 }
 0x1c8   : > { %v347_v21 = vadd.f32 1e-05, %v339_v19  ;;  %v350_v22 = vadd.f32 1e-05, %v342_v20 }
 0x1c9   : > { %v334_v23 = vpop.xlane.xlu1 %333  ;;  %v328_v24 = vpop.xlane.xlu0 %327 }
 0x1ca   : > { %749 = vrsqrt.f32 %v347_v21  ;;  %v343_v25 = vmul.f32 0.0078125, %v334_v23  ;;  %v340_v26 = vmul.f32 0.0078125, %v328_v24 }
 0x1cb   : > { %751 = vrsqrt.f32 %v350_v22 }
 0x1cc   : > { %v351_v27 = vadd.f32 1e-05, %v343_v25  ;;  %v348_v28 = vadd.f32 1e-05, %v340_v26 }
 0x1cd   : > { %v336_v29 = vpop.xlane.xlu0 %335 }
 0x1ce   : > { %753 = vrsqrt.f32 %v351_v27  ;;  %v344_v30 = vmul.f32 0.0078125, %v336_v29 }
 0x1cf   : > { %v744_v31 = vpop.eup %743  ;;  %755 = vrsqrt.f32 %v348_v28 }
 0x1d0   : > { %v352_v32 = vadd.f32 1e-05, %v344_v30  ;;  %v361_v33 = vmul.f32 %v744_v31, %v960_v34 }
 0x1d2   : > { %757 = vrsqrt.f32 %v352_v32  ;;  %v376_v38 = vmul.f32 %v627_v35, %v361_v33 }
 0x1d3   : > { %v746_v36 = vpop.eup %745 }
 0x1d4   : > { %v748_v37 = vpop.eup %747  ;;  %v365_v43 = vmul.f32 %v746_v36, %v966_v41  ;;  %v391_v34 = vadd.f32 %v628_v42, %v376_v38 }
 0x1d5   : > { %v362_v39 = vmul.f32 %v748_v37, %v964_v40 }
 0x1d6   : > { %v380_v51 = vmul.f32 %v627_v35, %v365_v43 }
 0x1d7   : > { %v750_v44 = vpop.eup %749  ;;  %v377_v45 = vmul.f32 %v627_v35, %v362_v39 }
 0x1d8   : > { %v752_v46 = vpop.eup %751  ;;  %v363_v52 = vmul.f32 %v750_v44, %v972_v48  ;;  %v395_v59 = vadd.f32 %v628_v42, %v380_v51 }
 0x1d9   : > { %v392_v47 = vadd.f32 %v628_v42, %v377_v45  ;;  %v366_v50 = vmul.f32 %v752_v46, %v974_v49 }
 0x1da   : > { %v378_v61 = vmul.f32 %v627_v35, %v363_v52 }
 0x1db   : > { %v754_v53 = vpop.eup %753  ;;  %v399_v54 = vpack.c.bf16 %v392_v47, %v391_v34  ;;  %v381_v55 = vmul.f32 %v627_v35, %v366_v50 }
 0x1dc   : > { %v756_v40 = vpop.eup %755  ;;  %v367_v58 = vmul.f32 %v754_v53, %v980_v56  ;;  %v393_v48 = vadd.f32 %v628_v42, %v378_v61 }
 0x1dd   : > { %669 = vmatprep.mubr.bf16.mxu0 %v399_v54  ;;  %v396_v60 = vadd.f32 %v628_v42, %v381_v55  ;;  %v364_v41 = vmul.f32 %v756_v40, %v982_v57 }
 0x1de   : > { %v382_v2 = vmul.f32 %v627_v35, %v367_v58 }
 0x1df   : > { %v758_v63 = vpop.eup %757  ;;  %v401_v0 = vpack.c.bf16 %v396_v60, %v395_v59  ;;  %v379_v1 = vmul.f32 %v627_v35, %v364_v41 }
 0x1e0   : > { %v368_v49 = vmul.f32 %v758_v63, %v988_v62  ;;  %v397_v6 = vadd.f32 %v628_v42, %v382_v2 }
 0x1e1   : > { %673 = vmatprep.mubr.bf16.mxu1 %v401_v0  ;;  %v394_v3 = vadd.f32 %v628_v42, %v379_v1 }
 0x1e2   : > { %v383_v4 = vmul.f32 %v627_v35, %v368_v49 }
 0x1e3   : > { %v400_v5 = vpack.c.bf16 %v394_v3, %v393_v48 }
 0x1e4   : > { %v398_v56 = vadd.f32 %v628_v42, %v383_v4 }
 0x1e5   : > { %670 = vmatmul.mubr.bf16.vlgmr.msra.gmra.mxu0 %v400_v5 }
 0x1e6   : > { %v402_v7 = vpack.c.bf16 %v398_v56, %v397_v6 }
 0x1e8   : > { %674 = vmatmul.mubr.bf16.vlgmr.msra.gmra.mxu1 %v402_v7 }
 0x2a5   : > { %v671_v57 = vpop.f32.mrf.mxu0 }
 0x2a6   : > { %534 = vst.msk [vmem:[%s219_s10 + $0x10] sm:$0xff] %vm271_vm0, %v671_v57 }
 0x2a7   : > { %v501_v62 = vpop.f32.mrf.mxu0 }
 0x2a8   : > { %532 = vst.msk [vmem:[%s219_s10] sm:$0xff] %vm271_vm0, %v501_v62  ;;  %v675_v8 = vpop.f32.mrf.mxu1 }
 0x2a9   : > { %v672_v9 = vpop.f32.mrf.mxu0  ;;  %538 = vst.msk [vmem:[%s219_s10 + $0x30] sm:$0xff] %vm271_vm0, %v675_v8 }
 0x2aa   : > { %535 = vst.msk [vmem:[%s219_s10 + $0x18] sm:$0xff] %vm271_vm0, %v672_v9  ;;  %v517_v10 = vpop.f32.mrf.mxu1 }
 0x2ab   : > { %v504_v11 = vpop.f32.mrf.mxu0  ;;  %536 = vst.msk [vmem:[%s219_s10 + $0x20] sm:$0xff] %vm271_vm0, %v517_v10 }
 0x2ac   : > { %533 = vst.msk [vmem:[%s219_s10 + $0x8] sm:$0xff] %vm271_vm0, %v504_v11  ;;  %v676_v12 = vpop.f32.mrf.mxu1 }
 0x2ad   : > { %539 = vst.msk [vmem:[%s219_s10 + $0x38] sm:$0xff] %vm271_vm0, %v676_v12 }
 0x2ae   : > { %v520_v13 = vpop.f32.mrf.mxu1 }
 0x2af   : > { %537 = vst.msk [vmem:[%s219_s10 + $0x28] sm:$0xff] %vm271_vm0, %v520_v13 }
 0x2b0 PF: > { %p14_p9 = scmp.ge.s32.totalorder %s872_s20, 4   ;;  %s1066_s15 = smov %s813_s16 }
 0x2b1   : > { %s1067_s16 = smov %s817_s17  ;;  %s1068_s17 = smov %s882_s23 }
 0x2b2   : > { %s1069_s18 = smov %s872_s20  ;;  %16 = sbr.rel (!%p14_p9) target bundleno = 3 (0x3), region = 77 }
 0x2b7   :  { %562 = vsyncpa [#allocation3], 1 }
 0x2b8   :  { %564 = vsyncpa [#allocation3 + $0x1], 1 }

</bundles_post_ra>
